<compile_context>
chip_gen: v7x
topology: tpu7x:2x2x1
jax: 0.10.0
libtpu: 0.0.40
codegen_flags: <defaults>
</compile_context>

<pallas_src>
import functools
import math

import jax
import jax.numpy as jnp
from jax.experimental import pallas as pl
from jax.experimental.pallas import tpu as pltpu


def _partial_conv_kernel(x_ref, m_ref, w_ref, b_ref, out_ref, nm_ref, *,
                         KH, TH, Cout, Wo):
    # x_ref, m_ref : (Hp, W*Cin)  one row-padded sample, channels innermost.
    # w_ref        : (2*KH*W*Cin, (Cout+1)*Wo) combined block-Toeplitz weight.
    # b_ref        : (1, Cout*Wo) bias tiled as column index co*Wo + wo.
    # out_ref      : (TH, Cout*Wo) conv output slab (co-major, lane-dense).
    # nm_ref       : (TH, Wo) single-channel new_mask (same for every co).
    row0 = pl.multiple_of(pl.program_id(1) * TH, TH)
    rows = TH + KH - 1                                  # row tile + halo

    xblk = x_ref[pl.ds(row0, rows), :]
    mblk = m_ref[pl.ds(row0, rows), :]
    xmblk = xblk * mblk                                 # input * mask

    # im2col over the KH row taps only; the KW taps live inside the weight.
    parts = ([xmblk[kh:kh + TH, :] for kh in range(KH)]
             + [mblk[kh:kh + TH, :] for kh in range(KH)])
    op = jnp.concatenate(parts, axis=-1)                # (TH, 2*KH*W*Cin)

    # Single MXU matmul: conv(x*m) columns [0, Cout*Wo), mask_conv(mask)
    # columns [Cout*Wo, (Cout+1)*Wo).  f32 accumulation.
    res = jnp.dot(op, w_ref[...], preferred_element_type=jnp.float32)

    conv = res[:, :Cout * Wo]                           # conv(x*m), no bias
    msum = res[:, Cout * Wo:]                           # mask_conv(mask), exact
    holes = msum == 0.0                                 # no_update_holes
    new_mask = jnp.where(holes, 0.0, 1.0)               # (TH, Wo)
    mask_sum = jnp.where(holes, 1.0, msum)
    scale = pl.reciprocal(mask_sum, approx=True)        # EUP; msum is a small int

    # Broadcast the per-(row, wo) factors across Cout (co-major lane tiling).
    scale_e = jnp.concatenate([scale] * Cout, axis=-1)      # (TH, Cout*Wo)
    keep_e = jnp.concatenate([new_mask] * Cout, axis=-1)

    # output_pre = conv/mask_sum + bias ; output = 0 at holes.
    out_ref[...] = ((conv * scale_e + b_ref[...]) * keep_e).astype(out_ref.dtype)
    nm_ref[...] = new_mask.astype(nm_ref.dtype)


def partial_conv_forward(x_nchw, mask_nchw, weight_oihw, bias, padding, *,
                         compute_dtype=jnp.bfloat16, tile_h=8):
    """PartialConv.forward.  Inputs/outputs are NCHW (PyTorch convention)."""
    N, Cin, H, W = x_nchw.shape
    Cout, Cin_w, KH, KW = weight_oihw.shape
    assert Cin_w == Cin, "groups != 1 not supported"
    Ho = H + 2 * padding - KH + 1
    Wo = W + 2 * padding - KW + 1
    TH = tile_h if (Ho % tile_h == 0 and tile_h % 8 == 0) else Ho
    R = Ho // TH
    Hp = H + 2 * padding
    WC = W * Cin
    Kdim = KH * WC

    # --- glue: NCHW -> NHWC, pad rows only (column padding is folded into the
    # Toeplitz weight), flatten (W, Cin) onto the lane axis. ---
    def to_slab(a):
        a = jnp.transpose(a, (0, 2, 3, 1))
        a = jnp.pad(a, ((0, 0), (padding, padding), (0, 0), (0, 0)))
        return a.reshape(N, Hp, WC).astype(compute_dtype)

    x2 = to_slab(x_nchw)
    m2 = to_slab(mask_nchw)

    # --- combined block-Toeplitz weight (built once in plain JAX, tiny) ---
    iw = jnp.arange(W)
    wo = jnp.arange(Wo)
    kw_rel = iw[:, None] - wo[None, :] + padding          # (W, Wo): kw tap index
    band = (kw_rel >= 0) & (kw_rel < KW)                  # also encodes W zero-pad
    kwc = jnp.clip(kw_rel, 0, KW - 1)
    w_hwio = jnp.transpose(weight_oihw.astype(jnp.float32), (2, 3, 1, 0))  # (KH,KW,Cin,Cout)
    w_g = jnp.where(band[None, :, :, None, None],
                    w_hwio[:, kwc, :, :], 0.0)            # (KH, W, Wo, Cin, Cout)
    # rows: kh*W*Cin + iw*Cin + ci ; cols: co*Wo + wo
    w_x = jnp.transpose(w_g, (0, 1, 3, 4, 2)).reshape(Kdim, Cout * Wo)
    # mask_conv block: all-ones over the same band, independent of ci / kh.
    ones_band = jnp.broadcast_to(band[:, None, :], (W, Cin, Wo)).astype(jnp.float32)
    w_m = jnp.broadcast_to(ones_band.reshape(1, WC, Wo), (KH, WC, Wo)).reshape(Kdim, Wo)
    w_comb = jnp.zeros((2 * Kdim, (Cout + 1) * Wo), jnp.float32)
    w_comb = w_comb.at[:Kdim, :Cout * Wo].set(w_x)
    w_comb = w_comb.at[Kdim:, Cout * Wo:].set(w_m)
    w_comb = w_comb.astype(compute_dtype)

    bias_tiled = jnp.repeat(bias.astype(jnp.float32), Wo).reshape(1, Cout * Wo)

    kern = functools.partial(_partial_conv_kernel, KH=KH, TH=TH, Cout=Cout, Wo=Wo)
    out2, nm2 = pl.pallas_call(
        kern,
        grid=(N, R),
        in_specs=[
            # padded sample slab: resident across all row tiles of sample n
            pl.BlockSpec((None, Hp, WC), lambda n, r: (n, 0, 0)),
            pl.BlockSpec((None, Hp, WC), lambda n, r: (n, 0, 0)),
            # combined weight + tiled bias: resident across the whole grid
            pl.BlockSpec((2 * Kdim, (Cout + 1) * Wo), lambda n, r: (0, 0)),
            pl.BlockSpec((1, Cout * Wo), lambda n, r: (0, 0)),
        ],
        out_specs=[
            pl.BlockSpec((TH, Cout * Wo), lambda n, r: (n * R + r, 0)),
            pl.BlockSpec((TH, Wo), lambda n, r: (n * R + r, 0)),
        ],
        out_shape=[
            jax.ShapeDtypeStruct((N * Ho, Cout * Wo), jnp.float32),
            jax.ShapeDtypeStruct((N * Ho, Wo), jnp.float32),
        ],
        compiler_params=pltpu.CompilerParams(
            dimension_semantics=("parallel", "arbitrary"),
            vmem_limit_bytes=32 * 1024 * 1024),
    )(x2, m2, w_comb, bias_tiled)

    # (N*Ho, Cout*Wo) co-major slab -> NCHW; new_mask broadcast across Cout.
    out = out2.reshape(N, Ho, Cout, Wo).transpose(0, 2, 1, 3)
    new_mask = jnp.broadcast_to(nm2.reshape(N, 1, Ho, Wo), (N, Cout, Ho, Wo))
    return out, new_mask


def _reference_partial_conv(x, mask, weight, bias, padding):
    """Pure-JAX reference (mirrors the PyTorch forward)."""
    xm = x * mask
    dn = jax.lax.conv_dimension_numbers(x.shape, weight.shape,
                                        ("NCHW", "OIHW", "NCHW"))
    conv = jax.lax.conv_general_dilated(
        xm, weight, (1, 1), [(padding, padding)] * 2, dimension_numbers=dn)
    output = conv + bias.reshape(1, -1, 1, 1)
    ones_w = jnp.ones_like(weight)
    output_mask = jax.lax.conv_general_dilated(
        mask, ones_w, (1, 1), [(padding, padding)] * 2, dimension_numbers=dn)
    holes = output_mask == 0
    mask_sum = jnp.where(holes, 1.0, output_mask)
    output_bias = jnp.broadcast_to(bias.reshape(1, -1, 1, 1), output.shape)
    output_pre = (output - output_bias) / mask_sum + output_bias
    out = jnp.where(holes, 0.0, output_pre)
    new_mask = jnp.where(holes, 0.0, jnp.ones_like(out))
    return out, new_mask


if __name__ == "__main__":
    # Module config: PartialConv(in_channels=4, out_channels=8, kernel_size=3,
    #                            stride=1, padding=1, bias=True)
    N, Cin, H, W = 2, 4, 16, 16
    Cout, K, padding = 8, 3, 1

    key = jax.random.PRNGKey(0)
    kx, km, kw, kb = jax.random.split(key, 4)
    x = jax.random.normal(kx, (N, Cin, H, W), dtype=jnp.float32)
    mask = (jax.random.uniform(km, (N, Cin, H, W)) > 0.5).astype(jnp.float32)
    # input_conv: kaiming_normal_(fan_in) -> std = sqrt(2/fan_in).  The module
    # init zeroes the bias; use a nonzero one here to exercise the bias path.
    w_std = math.sqrt(2.0 / (Cin * K * K))
    weight = w_std * jax.random.normal(kw, (Cout, Cin, K, K), dtype=jnp.float32)
    bias = 0.1 * jax.random.normal(kb, (Cout,), dtype=jnp.float32)

    fwd = jax.jit(partial_conv_forward,
                  static_argnames=("padding", "compute_dtype", "tile_h"))
    ref_out, ref_mask = _reference_partial_conv(x, mask, weight, bias, padding)

    # bf16 MXU operands (default per v6e/v7x guidance), f32 accumulation.
    out, new_mask = fwd(x, mask, weight, bias, padding=padding,
                        compute_dtype=jnp.bfloat16)
    out, new_mask = jax.block_until_ready((out, new_mask))
    assert out.shape == (N, Cout, H, W) and new_mask.shape == (N, Cout, H, W)
    assert jnp.array_equal(new_mask, ref_mask)            # hole logic is exact
    assert jnp.allclose(out, ref_out, atol=5e-2, rtol=5e-2)

    # f32 operand path (tighter check of the Toeplitz-weight construction;
    # tolerance allows for MXU bf16 passes + approximate reciprocal).
    out32, nm32 = fwd(x, mask, weight, bias, padding=padding,
                      compute_dtype=jnp.float32)
    out32, nm32 = jax.block_until_ready((out32, nm32))
    assert jnp.array_equal(nm32, ref_mask)
    assert jnp.allclose(out32, ref_out, atol=2e-2, rtol=2e-2)

    print("KERNEL_OK")
</pallas_src>

<mosaic_0001>
module attributes {stable_mosaic.version = 11 : i64} {
  func.func @_partial_conv_kernel(%arg0: i32, %arg1: i32, %arg2: memref<1x18x64xbf16, #tpu.memory_space<vmem>>, %arg3: memref<1x18x64xbf16, #tpu.memory_space<vmem>>, %arg4: memref<384x144xbf16, #tpu.memory_space<vmem>>, %arg5: memref<1x128xf32, #tpu.memory_space<vmem>>, %arg6: memref<8x128xf32, #tpu.memory_space<vmem>>, %arg7: memref<8x16xf32, #tpu.memory_space<vmem>>) attributes {dimension_semantics = [#tpu.dimension_semantics<parallel>, #tpu.dimension_semantics<arbitrary>], iteration_bounds = array<i64: 2, 2>, scalar_prefetch = 0 : i64, scratch_operands = 0 : i64, tpu.core_type = #tpu.core_type<tc>, window_params = [{transform_indices = @transform_0, window_bounds = array<i64: 1, 18, 64>}, {transform_indices = @transform_1, window_bounds = array<i64: 1, 18, 64>}, {pipeline_mode = #tpu.pipeline_mode<synchronous>, transform_indices = @transform_2, window_bounds = array<i64: 384, 144>}, {pipeline_mode = #tpu.pipeline_mode<synchronous>, transform_indices = @transform_3, window_bounds = array<i64: 1, 128>}, {transform_indices = @transform_4, window_bounds = array<i64: 8, 128>}, {transform_indices = @transform_5, window_bounds = array<i64: 8, 16>}]} {
    %c8_i32 = arith.constant 8 : i32
    %0 = arith.muli %arg1, %c8_i32 : i32
    %1 = tpu.assume_multiple %0, 8 : i32
    %c0 = arith.constant 0 : index
    %2 = arith.index_cast %1 : i32 to index
    %c0_0 = arith.constant 0 : index
    %3 = vector.load %arg2[%c0, %2, %c0_0] : memref<1x18x64xbf16, #tpu.memory_space<vmem>>, vector<1x10x64xbf16>
    %4 = vector.shape_cast %3 : vector<1x10x64xbf16> to vector<10x64xbf16>
    %c0_1 = arith.constant 0 : index
    %5 = arith.index_cast %1 : i32 to index
    %c0_2 = arith.constant 0 : index
    %6 = vector.load %arg3[%c0_1, %5, %c0_2] : memref<1x18x64xbf16, #tpu.memory_space<vmem>>, vector<1x10x64xbf16>
    %7 = vector.shape_cast %6 : vector<1x10x64xbf16> to vector<10x64xbf16>
    %8 = arith.mulf %4, %7 : vector<10x64xbf16>
    %9 = vector.extract_strided_slice %8 {offsets = [0, 0], sizes = [8, 64], strides = [1, 1]} : vector<10x64xbf16> to vector<8x64xbf16>
    %10 = vector.extract_strided_slice %8 {offsets = [1, 0], sizes = [8, 64], strides = [1, 1]} : vector<10x64xbf16> to vector<8x64xbf16>
    %11 = vector.extract_strided_slice %8 {offsets = [2, 0], sizes = [8, 64], strides = [1, 1]} : vector<10x64xbf16> to vector<8x64xbf16>
    %12 = vector.extract_strided_slice %7 {offsets = [0, 0], sizes = [8, 64], strides = [1, 1]} : vector<10x64xbf16> to vector<8x64xbf16>
    %13 = vector.extract_strided_slice %7 {offsets = [1, 0], sizes = [8, 64], strides = [1, 1]} : vector<10x64xbf16> to vector<8x64xbf16>
    %14 = vector.extract_strided_slice %7 {offsets = [2, 0], sizes = [8, 64], strides = [1, 1]} : vector<10x64xbf16> to vector<8x64xbf16>
    %15 = tpu.concatenate %9, %10, %11, %12, %13, %14 in 1 : vector<8x64xbf16>, vector<8x64xbf16>, vector<8x64xbf16>, vector<8x64xbf16>, vector<8x64xbf16>, vector<8x64xbf16> -> vector<8x384xbf16>
    %c0_3 = arith.constant 0 : index
    %c0_4 = arith.constant 0 : index
    %16 = vector.load %arg4[%c0_3, %c0_4] : memref<384x144xbf16, #tpu.memory_space<vmem>>, vector<384x144xbf16>
    %cst = arith.constant dense<0.000000e+00> : vector<8x144xf32>
    %17 = tpu.matmul %15, %16, %cst {dimension_numbers = #tpu.dot_dimension_numbers<[1], [0], [0], [1], [0, 0, 1, 1], [], []>} : vector<8x384xbf16>, vector<384x144xbf16>, vector<8x144xf32> -> vector<8x144xf32>
    %18 = vector.extract_strided_slice %17 {offsets = [0, 0], sizes = [8, 128], strides = [1, 1]} : vector<8x144xf32> to vector<8x128xf32>
    %19 = vector.extract_strided_slice %17 {offsets = [0, 128], sizes = [8, 16], strides = [1, 1]} : vector<8x144xf32> to vector<8x16xf32>
    %cst_5 = arith.constant 0.000000e+00 : f32
    %20 = vector.broadcast %cst_5 : f32 to vector<8x16xf32>
    %21 = arith.cmpf oeq, %19, %20 : vector<8x16xf32>
    %cst_6 = arith.constant 0.000000e+00 : f32
    %cst_7 = arith.constant 1.000000e+00 : f32
    %22 = vector.broadcast %cst_6 : f32 to vector<8x16xf32>
    %23 = vector.broadcast %cst_7 : f32 to vector<8x16xf32>
    %24 = arith.select %21, %22, %23 : vector<8x16xi1>, vector<8x16xf32>
    %cst_8 = arith.constant 1.000000e+00 : f32
    %25 = vector.broadcast %cst_8 : f32 to vector<8x16xf32>
    %26 = arith.select %21, %25, %19 : vector<8x16xi1>, vector<8x16xf32>
    %27 = tpu.reciprocal %26 {approx = true} : vector<8x16xf32> -> vector<8x16xf32>
    %28 = tpu.concatenate %27, %27, %27, %27, %27, %27, %27, %27 in 1 : vector<8x16xf32>, vector<8x16xf32>, vector<8x16xf32>, vector<8x16xf32>, vector<8x16xf32>, vector<8x16xf32>, vector<8x16xf32>, vector<8x16xf32> -> vector<8x128xf32>
    %29 = tpu.concatenate %24, %24, %24, %24, %24, %24, %24, %24 in 1 : vector<8x16xf32>, vector<8x16xf32>, vector<8x16xf32>, vector<8x16xf32>, vector<8x16xf32>, vector<8x16xf32>, vector<8x16xf32>, vector<8x16xf32> -> vector<8x128xf32>
    %30 = arith.mulf %18, %28 : vector<8x128xf32>
    %c0_9 = arith.constant 0 : index
    %c0_10 = arith.constant 0 : index
    %31 = vector.load %arg5[%c0_9, %c0_10] : memref<1x128xf32, #tpu.memory_space<vmem>>, vector<1x128xf32>
    %32 = vector.broadcast %31 : vector<1x128xf32> to vector<8x128xf32>
    %33 = arith.addf %30, %32 : vector<8x128xf32>
    %34 = arith.mulf %33, %29 : vector<8x128xf32>
    %c0_11 = arith.constant 0 : index
    %c0_12 = arith.constant 0 : index
    %35 = vector.load %arg6[%c0_11, %c0_12] : memref<8x128xf32, #tpu.memory_space<vmem>>, vector<8x128xf32>
    tpu.vector_store %arg6[%c0_11, %c0_12], %34 {strides = array<i32>} : memref<8x128xf32, #tpu.memory_space<vmem>>, vector<8x128xf32>,
    %c0_13 = arith.constant 0 : index
    %c0_14 = arith.constant 0 : index
    %36 = vector.load %arg7[%c0_13, %c0_14] : memref<8x16xf32, #tpu.memory_space<vmem>>, vector<8x16xf32>
    tpu.vector_store %arg7[%c0_13, %c0_14], %24 {strides = array<i32>} : memref<8x16xf32, #tpu.memory_space<vmem>>, vector<8x16xf32>,
    return
  }
  func.func @transform_0(%arg0: i32, %arg1: i32) -> (i32, i32, i32) {
    %c0_i32 = arith.constant 0 : i32
    %c0_i32_0 = arith.constant 0 : i32
    %c0_i32_1 = arith.constant 0 : i32
    return %arg0, %c0_i32, %c0_i32_0 : i32, i32, i32
  }
  func.func @transform_1(%arg0: i32, %arg1: i32) -> (i32, i32, i32) {
    %c0_i32 = arith.constant 0 : i32
    %c0_i32_0 = arith.constant 0 : i32
    %c0_i32_1 = arith.constant 0 : i32
    return %arg0, %c0_i32, %c0_i32_0 : i32, i32, i32
  }
  func.func @transform_2(%arg0: i32, %arg1: i32) -> (i32, i32) {
    %c0_i32 = arith.constant 0 : i32
    %c0_i32_0 = arith.constant 0 : i32
    %c0_i32_1 = arith.constant 0 : i32
    return %c0_i32, %c0_i32_0 : i32, i32
  }
  func.func @transform_3(%arg0: i32, %arg1: i32) -> (i32, i32) {
    %c0_i32 = arith.constant 0 : i32
    %c0_i32_0 = arith.constant 0 : i32
    %c0_i32_1 = arith.constant 0 : i32
    return %c0_i32, %c0_i32_0 : i32, i32
  }
  func.func @transform_4(%arg0: i32, %arg1: i32) -> (i32, i32) {
    %c2_i32 = arith.constant 2 : i32
    %0 = arith.muli %arg0, %c2_i32 : i32
    %1 = arith.addi %0, %arg1 : i32
    %c0_i32 = arith.constant 0 : i32
    %c0_i32_0 = arith.constant 0 : i32
    return %1, %c0_i32 : i32, i32
  }
  func.func @transform_5(%arg0: i32, %arg1: i32) -> (i32, i32) {
    %c2_i32 = arith.constant 2 : i32
    %0 = arith.muli %arg0, %c2_i32 : i32
    %1 = arith.addi %0, %arg1 : i32
    %c0_i32 = arith.constant 0 : i32
    %c0_i32_0 = arith.constant 0 : i32
    return %1, %c0_i32 : i32, i32
  }
}

</mosaic_0001>

<bundles_post_ra>
// kernel: partial_conv_forward.1
= control target key start
LH: loop header
LB: loop body
LE: loop exit
PB: predicated region body
PF: predicated region fallthrough
CT: control target
= control target key end

     0   :  { %s1199_s18 = smov 0   ;;  %s1201_s19 = smov 0   ;;  %s1455_s0 = inlined_call_operand.vmem [shape: bf16[2,18,64], index: 0, kind: input, shape index: {}]   ;;  %s1456_s1 = inlined_call_operand.vmem [shape: bf16[2,18,64], index: 1, kind: input, shape index: {}]   ;;  %s1457_s2 = inlined_call_operand.vmem [shape: bf16[384,144], index: 2, kind: input, shape index: {}]   ;;  %s1458_s3 = inlined_call_operand.vmem [shape: f32[1,128], index: 3, kind: input, shape index: {}]   ;;  %s1459_s4 = inlined_call_operand.vmem [shape: f32[32,128], index: 4, kind: output, shape index: {0}]   ;;  %s1460_s5 = inlined_call_operand.vmem [shape: f32[32,16], index: 5, kind: output, shape index: {1}]  }
   0x1   :  { %s1203_s20 = smov 0   ;;  %s1205_s21 = smov 0  }
   0x2   :  { %s1207_s22 = smov 0  }
   0x3 LB: > { %s25_s23 = sadd.s32 1, %s1150_s20  ;;  %s28_s24 = sadd.s32 1, %s1154_s21  ;;  %s1158_s22 = sphi %s1207_s22, %s16_s22   ;;  %s1154_s21 = sphi %s1205_s21, %s1464_s21   ;;  %s1150_s20 = sphi %s1203_s20, %s1463_s20   ;;  %s1146_s19 = sphi %s1201_s19, %s1462_s19   ;;  %s1142_s18 = sphi %s1199_s18, %s1461_s18  }
   0x4   : > { %p26_p0 = scmp.ge.s32.totalorder %s25_s23, 2  ;;  %p928_p1 = scmp.ge.s32.totalorder %s1158_s22, 1 }
   0x5   : > { %p220_p2 = scmp.lt.s32.totalorder %s1158_s22, 5 }
   0x6   : > { %s1466_s23 = smov (%p26_p0, %s25_s23), 0  ;;  %s1468_s24 = smov (!%p26_p0, %s28_s24), %s1154_s21 }
   0x7   : > { %p221_p3 = pnand %p928_p1, %p220_p2  ;;  %p30_p4 = scmp.ge.s32.totalorder %s1468_s24, 2 }
   0x8   : > { %p260_p5 = scmp.lt.s32.totalorder (!%p221_p3), %s1146_s19, 1  ;;  %s935_s25 = sshll.u32 (!%p221_p3), %s1142_s18, 3  ;;  %v1046_v0 = vld [vmem:[%s1457_s2 + $0x4] ss:$8 sps:$4 sm:$0xff] (!%p221_p3)   ;;  %v1048_v1 = vld [vmem:[%s1457_s2] ss:$8 sps:$4 sm:$0xff] (!%p221_p3)  }
   0x9   : > { %s1470_s24 = smov (%p30_p4, %s1468_s24), 0  ;;  %224 = sbr.rel (%p221_p3) target bundleno = 518 (0x206), region = 36 }
   0xa   : > { %s288_s28 = sshra.s32 (!%p221_p3), %s935_s25, 3  ;;  %634 = vmatprep.subr.bf16.mxu1 (!%p221_p3), %v1046_v0  ;;  %v1049_v2 = vld [vmem:[%s1457_s2 + $0x14] ss:$8 sps:$4 sm:$0xff] (!%p221_p3)   ;;  %v1051_v3 = vld [vmem:[%s1457_s2 + $0x10] ss:$8 sps:$4 sm:$0xff] (!%p221_p3)   ;;  %v1160_v5 = vmov (!%p221_p3), 0  }
   0xb   : > { %635 = vmatpush1.bf16.msra.mxu1 (!%p221_p3), %v1048_v1  ;;  %s936_s12 = sshll.u32 (!%p221_p3), %s288_s28, 2  ;;  %v1052_v4 = vld [vmem:[%s1457_s2 + $0x24] ss:$8 sps:$4 sm:$0xff] (!%p221_p3)   ;;  %707 = vmatprep.mubr.bf16.mxu0 (!%p221_p3), %v1160_v5  ;;  %v1054_v6 = vld [vmem:[%s1457_s2 + $0x20] ss:$8 sps:$4 sm:$0xff] (!%p221_p3)   ;;  %s1161_s9 = smov (!%p221_p3), 64  }
   0xc   : > { %636 = vmatprep.subr.bf16.mxu1 (!%p221_p3), %v1049_v2  ;;  %v1055_v7 = vld [vmem:[%s1457_s2 + $0x34] ss:$8 sps:$4 sm:$0xff] (!%p221_p3)   ;;  %v1057_v17 = vld [vmem:[%s1457_s2 + $0x30] ss:$8 sps:$4 sm:$0xff] (!%p221_p3)   ;;  %v1058_v18 = vld [vmem:[%s1457_s2 + $0x44] ss:$8 sps:$4 sm:$0xff] (!%p221_p3)  }
   0xd   : > { %v1070_v20 = vld [vmem:[%s1457_s2 + $0x104] ss:$8 sps:$4 sm:$0xff] (!%p221_p3)   ;;  %v1072_v21 = vld [vmem:[%s1457_s2 + $0x100] ss:$8 sps:$4 sm:$0xff] (!%p221_p3)   ;;  %v1061_v25 = vld [vmem:[%s1457_s2 + $0x54] ss:$8 sps:$4 sm:$0xff] (!%p221_p3)  }
   0xe   : > { %v1060_v24 = vld [vmem:[%s1457_s2 + $0x40] ss:$8 sps:$4 sm:$0xff] (!%p221_p3)   ;;  %675 = vmatprep.subr.bf16.mxu0 (!%p221_p3), %v1070_v20  ;;  %v1076_v26 = vld [vmem:[%s1457_s2 + $0x114] ss:$8 sps:$4 sm:$0xff] (!%p221_p3)   ;;  %v1078_v28 = vld [vmem:[%s1457_s2 + $0x110] ss:$8 sps:$4 sm:$0xff] (!%p221_p3)  }
   0xf   : > { %637 = vmatpush1.bf16.msra.mxu1 (!%p221_p3), %v1051_v3  ;;  %676 = vmatpush1.bf16.msra.mxu0 (!%p221_p3), %v1072_v21  ;;  %v1063_v30 = vld [vmem:[%s1457_s2 + $0x50] ss:$8 sps:$4 sm:$0xff] (!%p221_p3)   ;;  %v1082_v31 = vld [vmem:[%s1457_s2 + $0x124] ss:$8 sps:$4 sm:$0xff] (!%p221_p3)   ;;  %v1084_v32 = vld [vmem:[%s1457_s2 + $0x120] ss:$8 sps:$4 sm:$0xff] (!%p221_p3)  }
  0x10   : > { %s261_s6 = scalar_select %p260_p5, %s1146_s19, 1  ;;  %638 = vmatprep.subr.bf16.mxu1 %v1052_v4  ;;  %677 = vmatprep.subr.bf16.mxu0 %v1076_v26  ;;  %v1064_v33 = vld [vmem:[%s1457_s2 + $0x64] ss:$8 sps:$4 sm:$0xff]   ;;  %v1088_v34 = vld [vmem:[%s1457_s2 + $0x134] ss:$8 sps:$4 sm:$0xff]   ;;  %vm333_vm0 = vcmask 523264  }
  0x11   : > { %v1066_v35 = vld [vmem:[%s1457_s2 + $0x60] ss:$8 sps:$4 sm:$0xff]   ;;  %v1067_v36 = vld [vmem:[%s1457_s2 + $0x74] ss:$8 sps:$4 sm:$0xff]   ;;  %v1090_v37 = vld [vmem:[%s1457_s2 + $0x130] ss:$8 sps:$4 sm:$0xff]  }
  0x12   : > { %s994_s11 = smul.u32 12, %s261_s6  ;;  %v1094_v38 = vld [vmem:[%s1457_s2 + $0x144] ss:$8 sps:$4 sm:$0xff]   ;;  %v1069_v39 = vld [vmem:[%s1457_s2 + $0x70] ss:$8 sps:$4 sm:$0xff]   ;;  %s931_s28 = sshll.u32 %s1146_s19, 1 }
  0x13   : > { %639 = vmatpush1.bf16.msra.mxu1 %v1054_v6  ;;  %678 = vmatpush1.bf16.msra.mxu0 %v1078_v28  ;;  %v1073_v40 = vld [vmem:[%s1457_s2 + $0x84] ss:$8 sps:$4 sm:$0xff]   ;;  %v1096_v41 = vld [vmem:[%s1457_s2 + $0x140] ss:$8 sps:$4 sm:$0xff]   ;;  %v1100_v42 = vld [vmem:[%s1457_s2 + $0x154] ss:$8 sps:$4 sm:$0xff]   ;;  %s271_s7 = sadd.s32 %s1142_s18, %s931_s28 }
  0x14   : > { %s269_s17 = scalar_lea.vmem %s1456_s1, %s994_s11  ;;  %s264_s27 = scalar_lea.vmem %s1455_s0, %s994_s11  ;;  %640 = vmatprep.subr.bf16.mxu1 %v1055_v7  ;;  %679 = vmatprep.subr.bf16.mxu0 %v1082_v31  ;;  %v1075_v43 = vld [vmem:[%s1457_s2 + $0x80] ss:$8 sps:$4 sm:$0xff]   ;;  %v1079_v44 = vld [vmem:[%s1457_s2 + $0x94] ss:$8 sps:$4 sm:$0xff]   ;;  %v1102_v45 = vld [vmem:[%s1457_s2 + $0x150] ss:$8 sps:$4 sm:$0xff]  }
  0x15   : > { %s295_s29 = scalar_lea.vmem %s269_s17, %s936_s12  ;;  %s291_s30 = scalar_lea.vmem %s264_s27, %s936_s12  ;;  %v1106_v46 = vld [vmem:[%s1457_s2 + $0x164] ss:$8 sps:$4 sm:$0xff]   ;;  %v1081_v47 = vld [vmem:[%s1457_s2 + $0x90] ss:$8 sps:$4 sm:$0xff]   ;;  %v1108_v48 = vld [vmem:[%s1457_s2 + $0x160] ss:$8 sps:$4 sm:$0xff]  }
  0x16   : > { %v296_v8 = vld [vmem:[%s295_s29] sm:$0xf]  ;;  %v297_v9 = vld [vmem:[%s295_s29 + $0x4] sm:$0x1]  ;;  %v1112_v50 = vld [vmem:[%s1457_s2 + $0x174] ss:$8 sps:$4 sm:$0xff]  }
  0x17   : > { %v292_v10 = vld [vmem:[%s291_s30] sm:$0xf]  ;;  %v939_v11 = vcombine.low %v296_v8, %v296_v8  ;;  %v293_v12 = vld [vmem:[%s291_s30 + $0x4] sm:$0x1]  ;;  %v1265_v14 = vcombine.low %v296_v8, %v297_v9  ;;  %641 = vmatpush1.bf16.msra.mxu1 %v1057_v17  ;;  %680 = vmatpush1.bf16.msra.mxu0 %v1084_v32  ;;  %v1114_v52 = vld [vmem:[%s1457_s2 + $0x170] ss:$8 sps:$4 sm:$0xff]  }
  0x18   : > { %v1263_v13 = vmul.bf16 %v296_v8, %v292_v10  ;;  %v299_v15 = vmul.bf16 %v297_v9, %v293_v12  ;;  %642 = vmatprep.subr.bf16.mxu1 %v1058_v18  ;;  %681 = vmatprep.subr.bf16.mxu0 %v1088_v34  ;;  %v1085_v49 = vld [vmem:[%s1457_s2 + $0xa4] ss:$8 sps:$4 sm:$0xff]   ;;  %v1087_v51 = vld [vmem:[%s1457_s2 + $0xa0] ss:$8 sps:$4 sm:$0xff]   ;;  %v1091_v53 = vld [vmem:[%s1457_s2 + $0xb4] ss:$8 sps:$4 sm:$0xff]  }
  0x19   : > { %318 = vrot.lane.b32.xlu0 %v939_v11, %s1161_s9  ;;  %v330_v16 = vrot.slane %v1265_v14, 1  ;;  %v1093_v54 = vld [vmem:[%s1457_s2 + $0xb0] ss:$8 sps:$4 sm:$0xff]   ;;  %v1097_v55 = vld [vmem:[%s1457_s2 + $0xc4] ss:$8 sps:$4 sm:$0xff]   ;;  %v326_v63 = vshll.u32 %v1265_v14, 16 }
  0x1a   : > { %v1276_v19 = vcombine.low %v1263_v13, %v299_v15  ;;  %v1099_v56 = vld [vmem:[%s1457_s2 + $0xc0] ss:$8 sps:$4 sm:$0xff]   ;;  %v1103_v57 = vld [vmem:[%s1457_s2 + $0xd4] ss:$8 sps:$4 sm:$0xff]   ;;  %v1105_v58 = vld [vmem:[%s1457_s2 + $0xd0] ss:$8 sps:$4 sm:$0xff]  }
  0x1b   : > { %331 = vrot.lane.b32.xlu1 %v330_v16, %s1161_s9  ;;  %643 = vmatpush1.bf16.msra.mxu1 %v1060_v24  ;;  %v1109_v59 = vld [vmem:[%s1457_s2 + $0xe4] ss:$8 sps:$4 sm:$0xff]   ;;  %v1111_v60 = vld [vmem:[%s1457_s2 + $0xe0] ss:$8 sps:$4 sm:$0xff]   ;;  %v1115_v61 = vld [vmem:[%s1457_s2 + $0xf4] ss:$8 sps:$4 sm:$0xff]  }
  0x1c   : > { %v306_v22 = vshrl.u32 %v1276_v19, 16  ;;  %v308_v23 = vshll.u32 %v1276_v19, 16  ;;  %644 = vmatprep.subr.bf16.mxu1 %v1061_v25  ;;  %682 = vmatpush1.bf16.msra.mxu0 %v1090_v37  ;;  %v1117_v62 = vld [vmem:[%s1457_s2 + $0xf0] ss:$8 sps:$4 sm:$0xff]   ;;  %v324_v0 = vshrl.u32 %v1265_v14, 16  ;;  %v328_v1 = vrot.slane %v326_v63, 1 }
  0x1d   : > { %683 = vmatprep.subr.bf16.mxu0 %v1094_v38  ;;  %v314_v2 = vrot.slane %v1276_v19, 1  ;;  %p272_p6 = scmp.lt.s32.totalorder %s271_s7, 3  ;;  %vm742_vm1 = vcmask 130048   ;;  %v1162_v20 = vmov 1.0   ;;  %s1163_s11 = smov 16   ;;  %vm744_vm3 = vcmask 261120  }
  0x1e   : > { %v310_v27 = vrot.slane %v308_v23, 1  ;;  %v329_v3 = vor.u32 %v328_v1, %v324_v0  ;;  %s1164_s12 = smov 32   ;;  %s1165_s13 = smov 48   ;;  %vm746_vm4 = vcmask 392192   ;;  %vm749_vm5 = vcmask 654336  }
  0x1f   : > { %645 = vmatpush1.bf16.msra.mxu1 %v1063_v30  ;;  %s1472_s7 = smov (!%p272_p6, %s271_s7), 3  ;;  %s1166_s14 = smov 80   ;;  %vm751_vm6 = vcmask 785408   ;;  %vm753_vm7 = vcmask 916480  }
  0x20   : > { %v311_v29 = vor.u32 %v310_v27, %v306_v22  ;;  %646 = vmatprep.subr.bf16.mxu1 %v1064_v33  ;;  %684 = vmatpush1.bf16.msra.mxu0 %v1096_v41  ;;  %s932_s8 = sshll.u32 %s1472_s7, 3  ;;  %s1167_s15 = smov 96  }
  0x21   : > { %685 = vmatprep.subr.bf16.mxu0 %v1100_v42  ;;  %s283_s10 = scalar_lea.vmem %s1460_s5, %s932_s8  ;;  %s1168_s16 = smov 112  }
  0x22   : > { %312 = vrot.lane.b32.xlu0 %v311_v29, %s1161_s9  ;;  %s275_s27 = scalar_lea.vmem %s1459_s4, %s932_s8 }
  0x23   : > { %647 = vmatpush1.bf16.msra.mxu1 %v1066_v35 }
  0x24   : > { %648 = vmatprep.subr.bf16.mxu1 %v1067_v36  ;;  %686 = vmatpush1.bf16.msra.mxu0 %v1102_v45  ;;  %v989_v45 = vld [vmem:[%s1458_s3] ss:$0 sm:$0xff] }
  0x25   : > { %687 = vmatprep.subr.bf16.mxu0 %v1106_v46 }
  0x27   : > { %649 = vmatpush1.bf16.msra.mxu1 %v1069_v39 }
  0x28   : > { %650 = vmatprep.subr.bf16.mxu1 %v1073_v40  ;;  %688 = vmatpush1.bf16.msra.mxu0 %v1108_v48 }
  0x29   : > { %689 = vmatprep.subr.bf16.mxu0 %v1112_v50 }
  0x2b   : > { %651 = vmatpush1.bf16.msra.mxu1 %v1075_v43 }
  0x2c   : > { %652 = vmatprep.subr.bf16.mxu1 %v1079_v44  ;;  %690 = vmatpush1.bf16.msra.mxu0 %v1114_v52 }
  0x2f   : > { %653 = vmatpush1.bf16.msra.mxu1 %v1081_v47 }
  0x30   : > { %654 = vmatprep.subr.bf16.mxu1 %v1085_v49 }
  0x33   : > { %655 = vmatpush1.bf16.msra.mxu1 %v1087_v51 }
  0x34   : > { %656 = vmatprep.subr.bf16.mxu1 %v1091_v53 }
  0x37   : > { %657 = vmatpush1.bf16.msra.mxu1 %v1093_v54 }
  0x38   : > { %658 = vmatprep.subr.bf16.mxu1 %v1097_v55 }
  0x3b   : > { %659 = vmatpush1.bf16.msra.mxu1 %v1099_v56 }
  0x3c   : > { %660 = vmatprep.subr.bf16.mxu1 %v1103_v57 }
  0x3f   : > { %661 = vmatpush1.bf16.msra.mxu1 %v1105_v58 }
  0x40   : > { %662 = vmatprep.subr.bf16.mxu1 %v1109_v59 }
  0x43   : > { %663 = vmatpush1.bf16.msra.mxu1 %v1111_v60 }
  0x44   : > { %664 = vmatprep.subr.bf16.mxu1 %v1115_v61 }
  0x47   : > { %665 = vmatpush1.bf16.msra.mxu1 %v1117_v62 }
  0x8b   : > { %v319_v4 = vpop.permute.xlu0 %318 }
  0x8c   : > { %v340_v5 = vsel %vm333_vm0, %v314_v2, %v319_v4 }
  0x8d   : > { %v332_v6 = vpop.permute.xlu1 %331  ;;  %666 = vmatprep.mubr.bf16.mxu1 %v340_v5 }
  0x8e   : > { %v344_v7 = vsel %vm333_vm0, %v329_v3, %v332_v6 }
  0x8f   : > { %708 = vmatmul.mubr.bf16.vlgmr.msra.gmra.mrb[0].mxu0 %v344_v7 }
  0x94   : > { %v313_v8 = vpop.permute.xlu0 %312 }
  0x95   : > { %v336_v9 = vsel %vm333_vm0, %v1263_v13, %v313_v8 }
  0x96   : > { %667 = vmatmul.mubr.bf16.vlgmr.msra.gmra.mrb[0].mxu1 %v336_v9 }
 0x162   : > { %v709_v10 = vpop.f32.mrb[0].mxu0 }
 0x163   : > { %v711_v11 = vpop.f32.mrb[1].mxu0 }
 0x164   : > { %v713_v12 = vpop.f32.mrb[2].mxu0 }
 0x165   : > { %v714_v14 = vpop.f32.mrb[3].mxu0 }
 0x169   : > { %v668_v15 = vpop.f32.mrb[0].mxu1 }
 0x16a   : > { %v1411_v16 = vadd.f32 %v709_v10, %v668_v15  ;;  %v670_v17 = vpop.f32.mrb[1].mxu1 }
 0x16b   : > { %v712_v18 = vadd.f32 %v711_v11, %v670_v17  ;;  %v672_v19 = vpop.f32.mrb[2].mxu1 }
 0x16c   : > { %v673_v13 = vpop.f32.mrb[3].mxu1 }
 0x16d   : > { %vm716_vm2 = vcmp.eq.f32.partialorder %v712_v18, 0.0 }
 0x16e   : > { %v717_v21 = vsel %vm716_vm2, 0.0, %v1162_v20  ;;  %v718_v22 = vsel %vm716_vm2, 1.0, %v712_v18 }
 0x16f   : > { %1118 = vrcp.f32 %v718_v22  ;;  %765 = vrot.lane.b32.xlu1 %v717_v21, %s1161_s9  ;;  %756 = vrot.lane.b32.xlu0 %v717_v21, %s1163_s11  ;;  %795 = vst.msk [vmem:[%s283_s10] sm:$0xff] %vm742_vm1, %v717_v21 }
 0x173   : > { %759 = vrot.lane.b32.xlu0 %v717_v21, %s1164_s12 }
 0x177   : > { %762 = vrot.lane.b32.xlu0 %v717_v21, %s1165_s13 }
 0x179   : > { %v1119_v23 = vpop.eup %1118 }
 0x17a   : > { %721 = vrot.lane.b32.xlu1 %v1119_v23, %s1163_s11 }
 0x17b   : > { %724 = vrot.lane.b32.xlu0 %v1119_v23, %s1164_s12 }
 0x17e   : > { %727 = vrot.lane.b32.xlu1 %v1119_v23, %s1165_s13 }
 0x17f   : > { %730 = vrot.lane.b32.xlu0 %v1119_v23, %s1161_s9 }
 0x182   : > { %733 = vrot.lane.b32.xlu1 %v1119_v23, %s1166_s14 }
 0x183   : > { %768 = vrot.lane.b32.xlu0 %v717_v21, %s1166_s14 }
 0x186   : > { %736 = vrot.lane.b32.xlu1 %v1119_v23, %s1167_s15 }
 0x187   : > { %774 = vrot.lane.b32.xlu0 %v717_v21, %s1168_s16 }
 0x18a   : > { %739 = vrot.lane.b32.xlu1 %v1119_v23, %s1168_s16 }
 0x18e   : > { %771 = vrot.lane.b32.xlu1 %v717_v21, %s1167_s15 }
 0x1e1   : > { %v757_v24 = vpop.permute.xlu0 %756  ;;  %v766_v26 = vpop.permute.xlu1 %765 }
 0x1e2   : > { %v777_v37 = vsel %vm742_vm1, %v717_v21, %v757_v24 }
 0x1e5   : > { %v760_v25 = vpop.permute.xlu0 %759 }
 0x1e6   : > { %v778_v39 = vsel %vm744_vm3, %v777_v37, %v760_v25 }
 0x1e9   : > { %v763_v27 = vpop.permute.xlu0 %762 }
 0x1ea   : > { %v779_v42 = vsel %vm746_vm4, %v778_v39, %v763_v27 }
 0x1eb   : > { %v780_v48 = vsel %vm333_vm0, %v779_v42, %v766_v26 }
 0x1ec   : > { %v722_v28 = vpop.permute.xlu1 %721 }
 0x1ed   : > { %v725_v29 = vpop.permute.xlu0 %724  ;;  %v743_v31 = vsel %vm742_vm1, %v1119_v23, %v722_v28 }
 0x1ee   : > { %v745_v34 = vsel %vm744_vm3, %v743_v31, %v725_v29 }
 0x1f0   : > { %v728_v30 = vpop.permute.xlu1 %727 }
 0x1f1   : > { %v731_v33 = vpop.permute.xlu0 %730  ;;  %v747_v35 = vsel %vm746_vm4, %v745_v34, %v728_v30 }
 0x1f2   : > { %v748_v38 = vsel %vm333_vm0, %v747_v35, %v731_v33 }
 0x1f4   : > { %v734_v32 = vpop.permute.xlu1 %733 }
 0x1f5   : > { %v750_v40 = vsel %vm749_vm5, %v748_v38, %v734_v32  ;;  %v769_v41 = vpop.permute.xlu0 %768 }
 0x1f6   : > { %v781_v49 = vsel %vm749_vm5, %v780_v48, %v769_v41 }
 0x1f8   : > { %v737_v36 = vpop.permute.xlu1 %736 }
 0x1f9   : > { %v752_v43 = vsel %vm751_vm6, %v750_v40, %v737_v36  ;;  %v775_v52 = vpop.permute.xlu0 %774 }
 0x1fc   : > { %v740_v44 = vpop.permute.xlu1 %739 }
 0x1fd   : > { %v754_v46 = vsel %vm753_vm7, %v752_v43, %v740_v44 }
 0x1fe   : > { %v784_v47 = vmul.f32 %v754_v46, %v1411_v16 }
 0x200   : > { %v792_v50 = vadd.f32 %v989_v45, %v784_v47  ;;  %v772_v51 = vpop.permute.xlu1 %771 }
 0x201   : > { %v782_v53 = vsel %vm751_vm6, %v781_v49, %v772_v51 }
 0x202   : > { %v783_v54 = vsel %vm753_vm7, %v782_v53, %v775_v52 }
 0x203   : > { %v793_v55 = vmul.f32 %v792_v50, %v783_v54 }
 0x205   : > { %794 = vst [vmem:[%s275_s27] sm:$0xff] %v793_v55 }
 0x206 PF: > { %s16_s22 = sadd.s32 1, %s1158_s22   ;;  %s1461_s18 = smov %s1150_s20 }
 0x207   : > { %p13_p7 = scmp.ge.s32.totalorder %s16_s22, 6   ;;  %s1462_s19 = smov %s1154_s21 }
 0x208   : > { %s1463_s20 = smov %s1466_s23  ;;  %s1464_s21 = smov %s1470_s24 }
 0x209   :  { %15 = sbr.rel (!%p13_p7) target bundleno = 3 (0x3), region = 83 }

</bundles_post_ra>
